<compile_context>
chip_gen: v6e
topology: v6e:2x2x1
jax: 0.10.0
libtpu: 0.0.40
codegen_flags: <defaults>
</compile_context>

<pallas_src>
import jax
import jax.numpy as jnp
import numpy as np
from jax.experimental import pallas as pl
from jax.experimental.pallas import tpu as pltpu

A = 4  # all dims must equal the weight length for the forward to be well defined


# ----------------------------------------------------------------------------
# Fast kernel: single (A, A, A) input, packed (2, A) params, (A, A*A) output.
# ----------------------------------------------------------------------------
def _fused_kernel(x_ref, wb_ref, o_ref):
    """x_ref: (A, A, A); wb_ref: (2, A) [row0 = weight, row1 = bias];
    o_ref: (A, A*A) holding out.reshape(A, A*A), i.e. out[i, j, k] -> o[i, A*j + k]."""
    x = x_ref[...]                                   # (A, A, A) float32
    wb = wb_ref[...]                                 # (2, A)
    w_row = wb[0:1, :]                               # (1, A)
    b_row = wb[1:2, :]                               # (1, A)

    # F.linear with a 1-D weight: dot over the last dim, bias over the last dim.
    # Kept on the VPU/XLU (review item 4): elementwise mul + lane reduction.
    lin = jnp.sum(x * w_row[None, :, :], axis=-1) + b_row         # (A, A): lin[a, b]

    # Flattened-output lane index c = A*j + k.
    row4 = jax.lax.broadcasted_iota(jnp.int32, (A, A * A), 0)     # row index 0..A-1
    col = jax.lax.broadcasted_iota(jnp.int32, (A, A * A), 1)      # lane index c

    acc = jnp.zeros((A, A * A), dtype=jnp.float32)
    for s in range(A):
        # --- permuted-x term: v1[i, j, k] = x[k, i, j] ------------------------
        # Slab x[s] (indexed [i, j]) lands at lanes c = A*j + s:
        #   acc[i, A*j + s] += x[s, i, j];   S_s[j, c] = 1 iff c == A*j + s.
        s_mat = (col == A * row4 + s).astype(jnp.float32)          # (A, A*A)
        acc = acc + jnp.dot(x[s], s_mat, preferred_element_type=jnp.float32)

        # --- linear term: lin[j, k] broadcast over i --------------------------
        # Row lin[s, :] (over k) lands at lanes c = A*s + k for every output row:
        #   R_s[k, c] = 1 iff c == A*s + k.
        r_mat = (col == A * s + row4).astype(jnp.float32)          # (A, A*A)
        acc = acc + jnp.dot(lin[s:s + 1, :], r_mat,
                            preferred_element_type=jnp.float32)    # (1, A*A) -> bcast

    o_ref[...] = jnp.maximum(acc, 0.0)


def _forward_fast(x1, wb):
    vmem = pltpu.MemorySpace.VMEM
    out2d = pl.pallas_call(
        _fused_kernel,
        out_shape=jax.ShapeDtypeStruct((A, A * A), jnp.float32),
        in_specs=[
            pl.BlockSpec(memory_space=vmem),   # x1, passed as-is (no wrapper transpose)
            pl.BlockSpec(memory_space=vmem),   # packed [weight; bias]
        ],
        out_specs=pl.BlockSpec(memory_space=vmem),
    )(x1, wb)
    # Row-major (free) reshape back to the torch output layout; NOT a transpose.
    return out2d.reshape(A, A, A)


# ----------------------------------------------------------------------------
# Conservative fallback (the previously-validated structure): permute done by
# XLA in the wrapper, passed as a second operand.  Only used if the lane-
# scatter kernel fails to lower on this jax/libtpu build.
# ----------------------------------------------------------------------------
def _fused_kernel_fallback(x_ref, v1_ref, wb_ref, o_ref):
    x = x_ref[...]
    wb = wb_ref[...]
    w_row = wb[0:1, :]
    b_row = wb[1:2, :]
    lin = jnp.sum(x * w_row[None, :, :], axis=-1) + b_row          # (A, A)
    o_ref[...] = jnp.maximum(lin[None, :, :] + v1_ref[...], 0.0)


def _forward_fallback(x1, wb):
    vmem = pltpu.MemorySpace.VMEM
    v1 = jnp.transpose(x1, (1, 2, 0))
    return pl.pallas_call(
        _fused_kernel_fallback,
        out_shape=jax.ShapeDtypeStruct((A, A, A), jnp.float32),
        in_specs=[pl.BlockSpec(memory_space=vmem)] * 3,
        out_specs=pl.BlockSpec(memory_space=vmem),
    )(x1, v1, wb)


def model_forward(x1, w, bias):
    wb = jnp.stack([w, bias]).astype(jnp.float32)                  # (2, A): one aux DMA
    try:
        return jax.block_until_ready(_forward_fast(x1, wb))
    except Exception:
        # Compatibility guard: if this Mosaic build rejects the tiny 0/1
        # lane-scatter matmuls, fall back to the previously validated kernel.
        return jax.block_until_ready(_forward_fallback(x1, wb))


def model_forward_ref(x1, w, bias):
    lin = jnp.sum(x1 * w[None, None, :], axis=-1) + bias[None, :]
    v1 = jnp.transpose(x1, (1, 2, 0))
    return jnp.maximum(lin[None, :, :] + v1, 0.0)


if __name__ == "__main__":
    key = jax.random.PRNGKey(0)
    k_x, k_w = jax.random.split(key)

    # Deterministic stand-ins for the parameters the module draws in forward().
    x1 = jax.random.normal(k_x, (A, A, A), dtype=jnp.float32)
    w = jax.random.normal(k_w, (A,), dtype=jnp.float32)
    bias = jnp.array([0.0, 1.0, 2.0, 3.0], dtype=jnp.float32)

    out = jax.block_until_ready(model_forward(x1, w, bias))
    ref = model_forward_ref(x1, w, bias)
    np.testing.assert_allclose(np.asarray(out), np.asarray(ref), rtol=1e-4, atol=1e-4)

    print("KERNEL_OK")
</pallas_src>

<mosaic_0001>
module attributes {stable_mosaic.version = 11 : i64} {
  func.func @_fused_kernel(%arg0: memref<4x4x4xf32, #tpu.memory_space<vmem>>, %arg1: memref<2x4xf32, #tpu.memory_space<vmem>>, %arg2: memref<4x16xf32, #tpu.memory_space<vmem>>) attributes {dimension_semantics = [], scalar_prefetch = 0 : i64, scratch_operands = 0 : i64, tpu.core_type = #tpu.core_type<tc>} {
    %c0 = arith.constant 0 : index
    %c0_0 = arith.constant 0 : index
    %c0_1 = arith.constant 0 : index
    %0 = vector.load %arg0[%c0, %c0_0, %c0_1] : memref<4x4x4xf32, #tpu.memory_space<vmem>>, vector<4x4x4xf32>
    %c0_2 = arith.constant 0 : index
    %c0_3 = arith.constant 0 : index
    %1 = vector.load %arg1[%c0_2, %c0_3] : memref<2x4xf32, #tpu.memory_space<vmem>>, vector<2x4xf32>
    %2 = vector.extract_strided_slice %1 {offsets = [0, 0], sizes = [1, 4], strides = [1, 1]} : vector<2x4xf32> to vector<1x4xf32>
    %3 = vector.extract_strided_slice %1 {offsets = [1, 0], sizes = [1, 4], strides = [1, 1]} : vector<2x4xf32> to vector<1x4xf32>
    %4 = vector.shape_cast %2 : vector<1x4xf32> to vector<1x1x4xf32>
    %5 = vector.broadcast %4 : vector<1x1x4xf32> to vector<4x4x4xf32>
    %6 = arith.mulf %0, %5 : vector<4x4x4xf32>
    %cst = arith.constant dense<0.000000e+00> : vector<4x4xf32>
    %7 = vector.multi_reduction <add>, %6, %cst [2] : vector<4x4x4xf32> to vector<4x4xf32>
    %8 = vector.broadcast %3 : vector<1x4xf32> to vector<4x4xf32>
    %9 = arith.addf %7, %8 : vector<4x4xf32>
    %10 = tpu.iota {dimensions = array<i32: 0>} : vector<4x16xi32>
    %11 = tpu.iota {dimensions = array<i32: 1>} : vector<4x16xi32>
    %cst_4 = arith.constant 0.000000e+00 : f32
    %12 = vector.broadcast %cst_4 : f32 to vector<4x16xf32>
    %c4_i32 = arith.constant 4 : i32
    %13 = vector.broadcast %c4_i32 : i32 to vector<4x16xi32>
    %14 = arith.muli %13, %10 : vector<4x16xi32>
    %c0_i32 = arith.constant 0 : i32
    %15 = vector.broadcast %c0_i32 : i32 to vector<4x16xi32>
    %16 = arith.addi %14, %15 : vector<4x16xi32>
    %17 = arith.cmpi eq, %11, %16 : vector<4x16xi32>
    %18 = arith.extui %17 : vector<4x16xi1> to vector<4x16xi32>
    %19 = arith.sitofp %18 : vector<4x16xi32> to vector<4x16xf32>
    %20 = vector.extract_strided_slice %0 {offsets = [0, 0, 0], sizes = [1, 4, 4], strides = [1, 1, 1]} : vector<4x4x4xf32> to vector<1x4x4xf32>
    %21 = vector.shape_cast %20 : vector<1x4x4xf32> to vector<4x4xf32>
    %cst_5 = arith.constant dense<0.000000e+00> : vector<4x16xf32>
    %22 = tpu.matmul %21, %19, %cst_5 {dimension_numbers = #tpu.dot_dimension_numbers<[1], [0], [0], [1], [0, 0, 1, 1], [], []>} : vector<4x4xf32>, vector<4x16xf32>, vector<4x16xf32> -> vector<4x16xf32>
    %23 = arith.addf %12, %22 : vector<4x16xf32>
    %c0_i32_6 = arith.constant 0 : i32
    %24 = vector.broadcast %c0_i32_6 : i32 to vector<4x16xi32>
    %25 = arith.addi %24, %10 : vector<4x16xi32>
    %26 = arith.cmpi eq, %11, %25 : vector<4x16xi32>
    %27 = arith.extui %26 : vector<4x16xi1> to vector<4x16xi32>
    %28 = arith.sitofp %27 : vector<4x16xi32> to vector<4x16xf32>
    %29 = vector.extract_strided_slice %9 {offsets = [0, 0], sizes = [1, 4], strides = [1, 1]} : vector<4x4xf32> to vector<1x4xf32>
    %cst_7 = arith.constant dense<0.000000e+00> : vector<1x16xf32>
    %30 = tpu.matmul %29, %28, %cst_7 {dimension_numbers = #tpu.dot_dimension_numbers<[1], [0], [0], [1], [0, 0, 1, 1], [], []>} : vector<1x4xf32>, vector<4x16xf32>, vector<1x16xf32> -> vector<1x16xf32>
    %31 = vector.broadcast %30 : vector<1x16xf32> to vector<4x16xf32>
    %32 = arith.addf %23, %31 : vector<4x16xf32>
    %c4_i32_8 = arith.constant 4 : i32
    %33 = vector.broadcast %c4_i32_8 : i32 to vector<4x16xi32>
    %34 = arith.muli %33, %10 : vector<4x16xi32>
    %c1_i32 = arith.constant 1 : i32
    %35 = vector.broadcast %c1_i32 : i32 to vector<4x16xi32>
    %36 = arith.addi %34, %35 : vector<4x16xi32>
    %37 = arith.cmpi eq, %11, %36 : vector<4x16xi32>
    %38 = arith.extui %37 : vector<4x16xi1> to vector<4x16xi32>
    %39 = arith.sitofp %38 : vector<4x16xi32> to vector<4x16xf32>
    %40 = vector.extract_strided_slice %0 {offsets = [1, 0, 0], sizes = [1, 4, 4], strides = [1, 1, 1]} : vector<4x4x4xf32> to vector<1x4x4xf32>
    %41 = vector.shape_cast %40 : vector<1x4x4xf32> to vector<4x4xf32>
    %cst_9 = arith.constant dense<0.000000e+00> : vector<4x16xf32>
    %42 = tpu.matmul %41, %39, %cst_9 {dimension_numbers = #tpu.dot_dimension_numbers<[1], [0], [0], [1], [0, 0, 1, 1], [], []>} : vector<4x4xf32>, vector<4x16xf32>, vector<4x16xf32> -> vector<4x16xf32>
    %43 = arith.addf %32, %42 : vector<4x16xf32>
    %c4_i32_10 = arith.constant 4 : i32
    %44 = vector.broadcast %c4_i32_10 : i32 to vector<4x16xi32>
    %45 = arith.addi %44, %10 : vector<4x16xi32>
    %46 = arith.cmpi eq, %11, %45 : vector<4x16xi32>
    %47 = arith.extui %46 : vector<4x16xi1> to vector<4x16xi32>
    %48 = arith.sitofp %47 : vector<4x16xi32> to vector<4x16xf32>
    %49 = vector.extract_strided_slice %9 {offsets = [1, 0], sizes = [1, 4], strides = [1, 1]} : vector<4x4xf32> to vector<1x4xf32>
    %cst_11 = arith.constant dense<0.000000e+00> : vector<1x16xf32>
    %50 = tpu.matmul %49, %48, %cst_11 {dimension_numbers = #tpu.dot_dimension_numbers<[1], [0], [0], [1], [0, 0, 1, 1], [], []>} : vector<1x4xf32>, vector<4x16xf32>, vector<1x16xf32> -> vector<1x16xf32>
    %51 = vector.broadcast %50 : vector<1x16xf32> to vector<4x16xf32>
    %52 = arith.addf %43, %51 : vector<4x16xf32>
    %c4_i32_12 = arith.constant 4 : i32
    %53 = vector.broadcast %c4_i32_12 : i32 to vector<4x16xi32>
    %54 = arith.muli %53, %10 : vector<4x16xi32>
    %c2_i32 = arith.constant 2 : i32
    %55 = vector.broadcast %c2_i32 : i32 to vector<4x16xi32>
    %56 = arith.addi %54, %55 : vector<4x16xi32>
    %57 = arith.cmpi eq, %11, %56 : vector<4x16xi32>
    %58 = arith.extui %57 : vector<4x16xi1> to vector<4x16xi32>
    %59 = arith.sitofp %58 : vector<4x16xi32> to vector<4x16xf32>
    %60 = vector.extract_strided_slice %0 {offsets = [2, 0, 0], sizes = [1, 4, 4], strides = [1, 1, 1]} : vector<4x4x4xf32> to vector<1x4x4xf32>
    %61 = vector.shape_cast %60 : vector<1x4x4xf32> to vector<4x4xf32>
    %cst_13 = arith.constant dense<0.000000e+00> : vector<4x16xf32>
    %62 = tpu.matmul %61, %59, %cst_13 {dimension_numbers = #tpu.dot_dimension_numbers<[1], [0], [0], [1], [0, 0, 1, 1], [], []>} : vector<4x4xf32>, vector<4x16xf32>, vector<4x16xf32> -> vector<4x16xf32>
    %63 = arith.addf %52, %62 : vector<4x16xf32>
    %c8_i32 = arith.constant 8 : i32
    %64 = vector.broadcast %c8_i32 : i32 to vector<4x16xi32>
    %65 = arith.addi %64, %10 : vector<4x16xi32>
    %66 = arith.cmpi eq, %11, %65 : vector<4x16xi32>
    %67 = arith.extui %66 : vector<4x16xi1> to vector<4x16xi32>
    %68 = arith.sitofp %67 : vector<4x16xi32> to vector<4x16xf32>
    %69 = vector.extract_strided_slice %9 {offsets = [2, 0], sizes = [1, 4], strides = [1, 1]} : vector<4x4xf32> to vector<1x4xf32>
    %cst_14 = arith.constant dense<0.000000e+00> : vector<1x16xf32>
    %70 = tpu.matmul %69, %68, %cst_14 {dimension_numbers = #tpu.dot_dimension_numbers<[1], [0], [0], [1], [0, 0, 1, 1], [], []>} : vector<1x4xf32>, vector<4x16xf32>, vector<1x16xf32> -> vector<1x16xf32>
    %71 = vector.broadcast %70 : vector<1x16xf32> to vector<4x16xf32>
    %72 = arith.addf %63, %71 : vector<4x16xf32>
    %c4_i32_15 = arith.constant 4 : i32
    %73 = vector.broadcast %c4_i32_15 : i32 to vector<4x16xi32>
    %74 = arith.muli %73, %10 : vector<4x16xi32>
    %c3_i32 = arith.constant 3 : i32
    %75 = vector.broadcast %c3_i32 : i32 to vector<4x16xi32>
    %76 = arith.addi %74, %75 : vector<4x16xi32>
    %77 = arith.cmpi eq, %11, %76 : vector<4x16xi32>
    %78 = arith.extui %77 : vector<4x16xi1> to vector<4x16xi32>
    %79 = arith.sitofp %78 : vector<4x16xi32> to vector<4x16xf32>
    %80 = vector.extract_strided_slice %0 {offsets = [3, 0, 0], sizes = [1, 4, 4], strides = [1, 1, 1]} : vector<4x4x4xf32> to vector<1x4x4xf32>
    %81 = vector.shape_cast %80 : vector<1x4x4xf32> to vector<4x4xf32>
    %cst_16 = arith.constant dense<0.000000e+00> : vector<4x16xf32>
    %82 = tpu.matmul %81, %79, %cst_16 {dimension_numbers = #tpu.dot_dimension_numbers<[1], [0], [0], [1], [0, 0, 1, 1], [], []>} : vector<4x4xf32>, vector<4x16xf32>, vector<4x16xf32> -> vector<4x16xf32>
    %83 = arith.addf %72, %82 : vector<4x16xf32>
    %c12_i32 = arith.constant 12 : i32
    %84 = vector.broadcast %c12_i32 : i32 to vector<4x16xi32>
    %85 = arith.addi %84, %10 : vector<4x16xi32>
    %86 = arith.cmpi eq, %11, %85 : vector<4x16xi32>
    %87 = arith.extui %86 : vector<4x16xi1> to vector<4x16xi32>
    %88 = arith.sitofp %87 : vector<4x16xi32> to vector<4x16xf32>
    %89 = vector.extract_strided_slice %9 {offsets = [3, 0], sizes = [1, 4], strides = [1, 1]} : vector<4x4xf32> to vector<1x4xf32>
    %cst_17 = arith.constant dense<0.000000e+00> : vector<1x16xf32>
    %90 = tpu.matmul %89, %88, %cst_17 {dimension_numbers = #tpu.dot_dimension_numbers<[1], [0], [0], [1], [0, 0, 1, 1], [], []>} : vector<1x4xf32>, vector<4x16xf32>, vector<1x16xf32> -> vector<1x16xf32>
    %91 = vector.broadcast %90 : vector<1x16xf32> to vector<4x16xf32>
    %92 = arith.addf %83, %91 : vector<4x16xf32>
    %cst_18 = arith.constant 0.000000e+00 : f32
    %93 = vector.broadcast %cst_18 : f32 to vector<4x16xf32>
    %94 = arith.maximumf %92, %93 : vector<4x16xf32>
    %c0_19 = arith.constant 0 : index
    %c0_20 = arith.constant 0 : index
    %95 = vector.load %arg2[%c0_19, %c0_20] : memref<4x16xf32, #tpu.memory_space<vmem>>, vector<4x16xf32>
    tpu.vector_store %arg2[%c0_19, %c0_20], %94 {strides = array<i32>} : memref<4x16xf32, #tpu.memory_space<vmem>>, vector<4x16xf32>,
    return
  }
}

module attributes {stable_mosaic.version = 11 : i64} {
  func.func @_fused_kernel_fallback(%arg0: memref<4x4x4xf32, #tpu.memory_space<vmem>>, %arg1: memref<4x4x4xf32, #tpu.memory_space<vmem>>, %arg2: memref<2x4xf32, #tpu.memory_space<vmem>>, %arg3: memref<4x4x4xf32, #tpu.memory_space<vmem>>) attributes {dimension_semantics = [], scalar_prefetch = 0 : i64, scratch_operands = 0 : i64, tpu.core_type = #tpu.core_type<tc>} {
    %c0 = arith.constant 0 : index
    %c0_0 = arith.constant 0 : index
    %c0_1 = arith.constant 0 : index
    %0 = vector.load %arg0[%c0, %c0_0, %c0_1] : memref<4x4x4xf32, #tpu.memory_space<vmem>>, vector<4x4x4xf32>
    %c0_2 = arith.constant 0 : index
    %c0_3 = arith.constant 0 : index
    %1 = vector.load %arg2[%c0_2, %c0_3] : memref<2x4xf32, #tpu.memory_space<vmem>>, vector<2x4xf32>
    %2 = vector.extract_strided_slice %1 {offsets = [0, 0], sizes = [1, 4], strides = [1, 1]} : vector<2x4xf32> to vector<1x4xf32>
    %3 = vector.extract_strided_slice %1 {offsets = [1, 0], sizes = [1, 4], strides = [1, 1]} : vector<2x4xf32> to vector<1x4xf32>
    %4 = vector.shape_cast %2 : vector<1x4xf32> to vector<1x1x4xf32>
    %5 = vector.broadcast %4 : vector<1x1x4xf32> to vector<4x4x4xf32>
    %6 = arith.mulf %0, %5 : vector<4x4x4xf32>
    %cst = arith.constant dense<0.000000e+00> : vector<4x4xf32>
    %7 = vector.multi_reduction <add>, %6, %cst [2] : vector<4x4x4xf32> to vector<4x4xf32>
    %8 = vector.broadcast %3 : vector<1x4xf32> to vector<4x4xf32>
    %9 = arith.addf %7, %8 : vector<4x4xf32>
    %10 = vector.shape_cast %9 : vector<4x4xf32> to vector<1x4x4xf32>
    %c0_4 = arith.constant 0 : index
    %c0_5 = arith.constant 0 : index
    %c0_6 = arith.constant 0 : index
    %11 = vector.load %arg1[%c0_4, %c0_5, %c0_6] : memref<4x4x4xf32, #tpu.memory_space<vmem>>, vector<4x4x4xf32>
    %12 = vector.broadcast %10 : vector<1x4x4xf32> to vector<4x4x4xf32>
    %13 = arith.addf %12, %11 : vector<4x4x4xf32>
    %cst_7 = arith.constant 0.000000e+00 : f32
    %14 = vector.broadcast %cst_7 : f32 to vector<4x4x4xf32>
    %15 = arith.maximumf %13, %14 : vector<4x4x4xf32>
    %c0_8 = arith.constant 0 : index
    %c0_9 = arith.constant 0 : index
    %c0_10 = arith.constant 0 : index
    %16 = vector.load %arg3[%c0_8, %c0_9, %c0_10] : memref<4x4x4xf32, #tpu.memory_space<vmem>>, vector<4x4x4xf32>
    tpu.vector_store %arg3[%c0_8, %c0_9, %c0_10], %15 {strides = array<i32>} : memref<4x4x4xf32, #tpu.memory_space<vmem>>, vector<4x4x4xf32>,
    return
  }
}

</mosaic_0001>

<bundles_post_ra>
// kernel: tpu_custom_call.1
= control target key start
LH: loop header
LB: loop body
LE: loop exit
PB: predicated region body
PF: predicated region fallthrough
CT: control target
= control target key end

     0   :  { %7 = vsyncpa [#allocation3], 0  ;;  %s1067_s0 = inlined_call_operand.hbm [shape: f32[4,4,4], index: 0, kind: input, shape index: {}]   ;;  %s1068_s1 = inlined_call_operand.hbm [shape: f32[2,4], index: 1, kind: input, shape index: {}]   ;;  %s1069_s2 = inlined_call_operand.hbm [shape: f32[4,16], index: 2, kind: output, shape index: {}]  }
   0x1   :  { %8 = vsyncpa [#allocation6], 0 }
   0x2   :  { %9 = vsyncpa [#allocation4], 0  ;;  %s947_s9 = smov [#allocation2]  }
   0x3   :  { %s15_s10 = sshll.u32 %s947_s9, 4  ;;  %s16_s10 = int_to_ptr.vmem [resolvable:$true] %s15_s10 }
   0x4   :  { %s889_s11 = scalar_lea.vmem %s16_s10, 256  ;;  %p894_p1 = scmp.lt.s32.totalorder %s16_s10, %s16_s10 }
   0x5   :  { %p890_p0 = scmp.ne.s32.totalorder %s16_s10, %s889_s11  ;;  %p895_p2 = scmp.lt.s32.totalorder %s889_s11, %s889_s11 }
   0x7   :  { %p896_p3 = por %p895_p2, %p894_p1 }
   0x9   :  { %p897_p4 = pnand %p896_p3, %p890_p0 }
   0xb   :  { %900 = shalt.err (!%p897_p4)
}
   0xc   :  { %s948_s12 = smov 64   ;;  %s949_s13 = smov 4  }
   0xd   :  { %21 = dma.hbm_to_vmem [thread:$0]  %s1067_s0, 256, %s16_s10, [#allocation3], %s948_s12, %s948_s12, %s949_s13  }
   0xe   :  { %s950_s16 = smov [#allocation5]  }
   0xf   :  { %s28_s17 = sshll.u32 %s950_s16, 4  ;;  %s29_s17 = int_to_ptr.vmem [resolvable:$true] %s28_s17 }
  0x10   :  { %s909_s18 = scalar_lea.vmem %s29_s17, 32  ;;  %p914_p6 = scmp.lt.s32.totalorder %s29_s17, %s29_s17 }
  0x11   :  { %p910_p5 = scmp.ne.s32.totalorder %s29_s17, %s909_s18  ;;  %p915_p7 = scmp.lt.s32.totalorder %s909_s18, %s909_s18 }
  0x13   :  { %p916_p8 = por %p915_p7, %p914_p6 }
  0x15   :  { %p917_p9 = pnand %p916_p8, %p910_p5 }
  0x17   :  { %920 = shalt.err (!%p917_p9)
}
  0x18   :  { %31 = dma.hbm_to_vmem [thread:$0]  %s1068_s1, 32, %s29_s17, [#allocation6]  }
  0x19   :  { %941 = dma.done.wait [#allocation3], 256  }
  0x1a   :  { %942 = vsyncadd [#allocation3], 4294967040 }
  0x1b   :  { %943 = dma.done.wait [#allocation6], 32  }
  0x1c   :  { %944 = vsyncadd [#allocation6], 4294967264  ;;  %v43_v0 = vlaneseq  ;;  %v38_v3 = vld [vmem:[#allocation2] sm:$0xf]  ;;  %v42_v4 = vld [vmem:[#allocation5] sm:$0x3] }
  0x1d   :  { %v981_v5 = vld [vmem:[#allocation2 + $0x8] sm:$0xf]  ;;  %v984_v7 = vld [vmem:[#allocation2 + $0x4] sm:$0xf]  ;;  %v986_v8 = vld [vmem:[#allocation2 + $0xc] sm:$0xf] }
  0x1e   :  { %v976_v1 = vshrl.u32 %v43_v0, 7  ;;  %vm51_vm0 = vcmask 27648   ;;  %v951_v18 = vmov 0   ;;  %v992_v20 = vand.u32 127, %v43_v0  ;;  %s954_s0 = smov [#allocation7]  }
  0x1f   :  { %880 = vset.pattern.permute.xlu0 %v951_v18  ;;  %879 = vset.pattern.permute.xlu1 %v951_v18  ;;  %v952_v22 = vmov 0.0   ;;  %vm99_vm1 = vcmask 1043456   ;;  %vm953_vm3 = vmmov 0   ;;  %vm96_vm5 = vcmask 31744   ;;  %s781_s1 = sshll.u32 %s954_s0, 4  ;;  %s782_s1 = int_to_ptr.vmem [resolvable:$true] %s781_s1 }
  0x20   :  { %v979_v2 = vsub.s32 0, %v976_v1  ;;  %v66_v17 = vsub.s32 1, %v976_v1  ;;  %v81_v21 = vmul.u32 4, %v976_v1  ;;  %836 = vmatprep.subr.mxu1 %v952_v22  ;;  %831 = vmatprep.subr.mxu0 %v952_v22  ;;  %vm85_vm4 = vcmp.eq.s32.totalorder %v992_v20, %v976_v1  ;;  %s921_s21 = scalar_lea.vmem %s782_s1, 64  ;;  %p926_p11 = scmp.lt.s32.totalorder %s782_s1, %s782_s1 }
  0x21   :  { %838 = vmatprep.mubr.msk.f32.mxu1 %vm953_vm3, %v952_v22  ;;  %833 = vmatprep.mubr.msk.f32.mxu0 %vm953_vm3, %v952_v22  ;;  %v792_v28 = vsel %vm85_vm4, 1.0, %v952_v22  ;;  %v334_v30 = vadd.s32 4, %v976_v1  ;;  %v94_v37 = vsub.s32 %v992_v20, %v976_v1  ;;  %v507_v39 = vadd.s32 8, %v976_v1  ;;  %p922_p10 = scmp.ne.s32.totalorder %s782_s1, %s921_s21  ;;  %p927_p12 = scmp.lt.s32.totalorder %s921_s21, %s921_s21 }
  0x22   :  { %v46_v6 = vrot.slane %v42_v4, %v979_v2  ;;  %v67_v19 = vrot.slane %v42_v4, %v66_v17  ;;  %vm82_vm2 = vcmp.eq.s32.totalorder %v992_v20, %v81_v21  ;;  %832 = vmatpush3.msk.msra.mxu0 %vm99_vm1, %v792_v28  ;;  %v253_v36 = vadd.s32 1, %v81_v21 }
  0x23   :  { %v791_v23 = vsel %vm82_vm2, 1.0, %v952_v22  ;;  %841 = vmatprep.subr.mxu0 %v952_v22  ;;  %vm335_vm6 = vcmp.eq.s32.totalorder %v992_v20, %v334_v30  ;;  %v426_v38 = vadd.s32 2, %v81_v21  ;;  %vm508_vm9 = vcmp.eq.s32.totalorder %v992_v20, %v507_v39  ;;  %p928_p13 = por %p927_p12, %p926_p11 }
  0x24   :  { %v47_v9 = vmul.f32 %v46_v6, %v38_v3  ;;  %v49_v10 = vmul.f32 %v46_v6, %v981_v5  ;;  %v48_v11 = vmul.f32 %v46_v6, %v984_v7  ;;  %v50_v12 = vmul.f32 %v46_v6, %v986_v8  ;;  %837 = vmatpush3.msk.msra.mxu1 %vm99_vm1, %v791_v23 }
  0x25   :  { %846 = vmatprep.subr.mxu1 %v952_v22  ;;  %839 = vmatmul.mubr.msk.f32.vlgmr.msra.gmra.mxu1 %vm96_vm5, %v38_v3  ;;  %v800_v33 = vsel %vm335_vm6, 1.0, %v952_v22  ;;  %vm254_vm7 = vcmp.eq.s32.totalorder %v992_v20, %v253_v36  ;;  %vm427_vm8 = vcmp.eq.s32.totalorder %v992_v20, %v426_v38  ;;  %v599_v43 = vadd.s32 3, %v81_v21  ;;  %p929_p0 = pnand %p928_p13, %p922_p10 }
  0x26   :  { %v52_v13 = vsel %vm51_vm0, %v47_v9, 0.0  ;;  %v58_v14 = vsel %vm51_vm0, %v49_v10, 0.0  ;;  %v55_v15 = vsel %vm51_vm0, %v48_v11, 0.0  ;;  %v61_v16 = vsel %vm51_vm0, %v50_v12, 0.0  ;;  %848 = vmatprep.mubr.msk.f32.mxu1 %vm953_vm3, %v952_v22  ;;  %847 = vmatpush3.msk.msra.mxu1 %vm99_vm1, %v800_v33 }
  0x27   :  { %53 = vadd.xlane.f32.xlu0 %v52_v13  ;;  %59 = vadd.xlane.f32.xlu1 %v58_v14  ;;  %v797_v42 = vsel %vm254_vm7, 1.0, %v952_v22  ;;  %v680_v44 = vadd.s32 12, %v976_v1  ;;  %v803_v47 = vsel %vm427_vm8, 1.0, %v952_v22  ;;  %v806_v48 = vsel %vm508_vm9, 1.0, %v952_v22 }
  0x28   :  { %856 = vmatprep.subr.mxu1 %v952_v22  ;;  %vm600_vm10 = vcmp.eq.s32.totalorder %v992_v20, %v599_v43  ;;  %vm773_vm12 = vcmask 125952  }
  0x29   :  { %vm681_vm11 = vcmp.eq.s32.totalorder %v992_v20, %v680_v44  ;;  %v809_v51 = vsel %vm600_vm10, 1.0, %v952_v22 }
  0x2a   :  { %v812_v52 = vsel %vm681_vm11, 1.0, %v952_v22 }
  0x2b   :  { %56 = vadd.xlane.f32.xlu0 %v55_v15  ;;  %62 = vadd.xlane.f32.xlu1 %v61_v16 }
  0x41   :  { %70 = vbcast.lane.b32.xlu0 %v67_v19, 256 }
  0xb0   :  { %v54_v24 = vpop.xlane.xlu0 %53  ;;  %v60_v25 = vpop.xlane.xlu1 %59 }
  0xb4   :  { %v57_v26 = vpop.xlane.xlu0 %56  ;;  %v63_v27 = vpop.xlane.xlu1 %62 }
  0xb8   :  { %v71_v29 = vpop.permute.xlu0 %70 }
  0xb9   :  { %v76_v31 = vadd.f32 %v71_v29, %v63_v27  ;;  %v73_v32 = vadd.f32 %v71_v29, %v54_v24  ;;  %v74_v34 = vadd.f32 %v71_v29, %v57_v26  ;;  %v75_v35 = vadd.f32 %v71_v29, %v60_v25 }
  0xbb   :  { %686 = vperm.xlu0 %880, %v76_v31   ;;  %90 = vperm.xlu1 %879, %v73_v32  }
  0xbf   :  { %340 = vperm.xlu1 %879, %v74_v34  }
  0xc3   :  { %513 = vperm.xlu1 %879, %v75_v35  }
  0xe5   :  { %v249_v55 = vpop.f32.mrf.mxu1 }
  0xe7   :  { %v840_v56 = vpop.f32.mrf.mxu1 }
 0x136   :  { %v91_v40 = vpop.permute.xlu1 %90  ;;  %v687_v53 = vpop.permute.xlu0 %686 }
 0x137   :  { %v95_v41 = vrot.slane %v91_v40, %v94_v37  ;;  %v691_v54 = vrot.slane %v687_v53, %v94_v37 }
 0x139   :  { %834 = vmatmul.mubr.msk.f32.vlgmr.msra.gmra.mxu0 %vm96_vm5, %v95_v41 }
 0x13a   :  { %842 = vmatpush3.msk.msra.mxu0 %vm99_vm1, %v797_v42  ;;  %v341_v45 = vpop.permute.xlu1 %340  ;;  %843 = vmatprep.mubr.msk.f32.mxu0 %vm953_vm3, %v952_v22 }
 0x13b   :  { %v345_v46 = vrot.slane %v341_v45, %v94_v37  ;;  %851 = vmatprep.subr.mxu0 %v952_v22 }
 0x13d   :  { %844 = vmatmul.mubr.msk.f32.vlgmr.msra.gmra.mxu0 %vm96_vm5, %v984_v7  ;;  %849 = vmatmul.mubr.msk.f32.vlgmr.msra.gmra.mxu1 %vm96_vm5, %v345_v46 }
 0x13e   :  { %852 = vmatpush3.msk.msra.mxu0 %vm99_vm1, %v803_v47  ;;  %857 = vmatpush3.msk.msra.mxu1 %vm99_vm1, %v806_v48  ;;  %v514_v49 = vpop.permute.xlu1 %513 }
 0x13f   :  { %v518_v50 = vrot.slane %v514_v49, %v94_v37  ;;  %853 = vmatprep.mubr.msk.f32.mxu0 %vm953_vm3, %v952_v22  ;;  %858 = vmatprep.mubr.msk.f32.mxu1 %vm953_vm3, %v952_v22 }
 0x140   :  { %861 = vmatprep.subr.mxu0 %v952_v22  ;;  %866 = vmatprep.subr.mxu1 %v952_v22 }
 0x141   :  { %854 = vmatmul.mubr.msk.f32.vlgmr.msra.gmra.mxu0 %vm96_vm5, %v981_v5  ;;  %859 = vmatmul.mubr.msk.f32.vlgmr.msra.gmra.mxu1 %vm96_vm5, %v518_v50 }
 0x142   :  { %862 = vmatpush3.msk.msra.mxu0 %vm99_vm1, %v809_v51  ;;  %867 = vmatpush3.msk.msra.mxu1 %vm99_vm1, %v812_v52 }
 0x143   :  { %863 = vmatprep.mubr.msk.f32.mxu0 %vm953_vm3, %v952_v22  ;;  %868 = vmatprep.mubr.msk.f32.mxu1 %vm953_vm3, %v952_v22 }
 0x145   :  { %864 = vmatmul.mubr.msk.f32.vlgmr.msra.gmra.mxu0 %vm96_vm5, %v986_v8  ;;  %869 = vmatmul.mubr.msk.f32.vlgmr.msra.gmra.mxu1 %vm96_vm5, %v691_v54 }
 0x1f9   :  { %v169_v57 = vpop.f32.mrf.mxu0 }
 0x1fa   :  { %v176_v58 = vrot.slane %v169_v57, %v979_v2 }
 0x1fb   :  { %v835_v59 = vpop.f32.mrf.mxu0 }
 0x1fc   :  { %v250_v60 = vadd.f32 %v249_v55, %v176_v58 }
 0x1fd   :  { %v329_v61 = vpop.f32.mrf.mxu0  ;;  %v417_v62 = vpop.f32.mrf.mxu1 }
 0x1fe   :  { %v333_v63 = vadd.f32 %v329_v61, %v250_v60  ;;  %v424_v0 = vrot.slane %v417_v62, %v979_v2 }
 0x1ff   :  { %v845_v1 = vpop.f32.mrf.mxu0  ;;  %v850_v3 = vpop.f32.mrf.mxu1 }
 0x200   :  { %v425_v4 = vadd.f32 %v424_v0, %v333_v63 }
 0x201   :  { %v502_v5 = vpop.f32.mrf.mxu0  ;;  %v590_v6 = vpop.f32.mrf.mxu1 }
 0x202   :  { %v506_v7 = vadd.f32 %v502_v5, %v425_v4  ;;  %v597_v8 = vrot.slane %v590_v6, %v979_v2 }
 0x203   :  { %v855_v9 = vpop.f32.mrf.mxu0  ;;  %v860_v10 = vpop.f32.mrf.mxu1 }
 0x204   :  { %v598_v11 = vadd.f32 %v597_v8, %v506_v7 }
 0x205   :  { %v675_v12 = vpop.f32.mrf.mxu0  ;;  %v763_v13 = vpop.f32.mrf.mxu1 }
 0x206   :  { %v679_v14 = vadd.f32 %v675_v12, %v598_v11  ;;  %v770_v15 = vrot.slane %v763_v13, %v979_v2 }
 0x207   :  { %v865_v16 = vpop.f32.mrf.mxu0  ;;  %v870_v17 = vpop.f32.mrf.mxu1 }
 0x208   :  { %v771_v18 = vadd.f32 %v770_v15, %v679_v14 }
 0x20a   :  { %v772_v19 = vmax.f32 %v771_v18, 0.0 }
 0x20c   :  { %774 = vst.msk [vmem:[#allocation7] sm:$0xf] %vm773_vm12, %v772_v19 }
 0x20d   :  { %932 = shalt.err (!%p929_p0)
}
 0x20e   :  { %784 = dma.vmem_to_hbm [thread:$0]  %s782_s1, 64, %s1069_s2, [#allocation4]  }
 0x20f   :  { %945 = dma.done.wait [#allocation4], 64  }
 0x210   :  { %946 = vsyncadd [#allocation4], 4294967232 }
 0x211   :  { %788 = vsyncpa [#allocation3], 1 }
 0x212   :  { %789 = vsyncpa [#allocation6], 1 }
 0x213   :  { %790 = vsyncpa [#allocation4], 1 }

// kernel: tpu_custom_call.1
= control target key start
LH: loop header
LB: loop body
LE: loop exit
PB: predicated region body
PF: predicated region fallthrough
CT: control target
= control target key end

     0   :  { %8 = vsyncpa [#allocation3], 0  ;;  %s580_s0 = inlined_call_operand.hbm [shape: f32[4,4,4], index: 0, kind: input, shape index: {}]   ;;  %s581_s1 = inlined_call_operand.hbm [shape: f32[4,4,4], index: 1, kind: input, shape index: {}]   ;;  %s582_s2 = inlined_call_operand.vmem [shape: f32[2,4], index: 2, kind: input, shape index: {}]   ;;  %s583_s3 = inlined_call_operand.hbm [shape: f32[4,4,4], index: 3, kind: output, shape index: {}]  }
   0x1   :  { %9 = vsyncpa [#allocation6], 0 }
   0x2   :  { %10 = vsyncpa [#allocation4], 0  ;;  %s495_s12 = smov [#allocation2]  }
   0x3   :  { %s16_s13 = sshll.u32 %s495_s12, 4  ;;  %s17_s13 = int_to_ptr.vmem [resolvable:$true] %s16_s13 }
   0x4   :  { %s437_s14 = scalar_lea.vmem %s17_s13, 256  ;;  %p442_p1 = scmp.lt.s32.totalorder %s17_s13, %s17_s13 }
   0x5   :  { %p438_p0 = scmp.ne.s32.totalorder %s17_s13, %s437_s14  ;;  %p443_p2 = scmp.lt.s32.totalorder %s437_s14, %s437_s14 }
   0x7   :  { %p444_p3 = por %p443_p2, %p442_p1 }
   0x9   :  { %p445_p4 = pnand %p444_p3, %p438_p0 }
   0xb   :  { %448 = shalt.err (!%p445_p4)
}
   0xc   :  { %s496_s15 = smov 64   ;;  %s497_s16 = smov 4  }
   0xd   :  { %22 = dma.hbm_to_vmem [thread:$0]  %s580_s0, 256, %s17_s13, [#allocation3], %s496_s15, %s496_s15, %s497_s16  }
   0xe   :  { %s498_s19 = smov [#allocation5]  }
   0xf   :  { %s28_s20 = sshll.u32 %s498_s19, 4  ;;  %s29_s20 = int_to_ptr.vmem [resolvable:$true] %s28_s20 }
  0x10   :  { %s457_s21 = scalar_lea.vmem %s29_s20, 256  ;;  %p462_p6 = scmp.lt.s32.totalorder %s29_s20, %s29_s20 }
  0x11   :  { %p458_p5 = scmp.ne.s32.totalorder %s29_s20, %s457_s21  ;;  %p463_p7 = scmp.lt.s32.totalorder %s457_s21, %s457_s21 }
  0x13   :  { %p464_p8 = por %p463_p7, %p462_p6 }
  0x15   :  { %p465_p9 = pnand %p464_p8, %p458_p5 }
  0x17   :  { %468 = shalt.err (!%p465_p9)
}
  0x18   :  { %34 = dma.hbm_to_vmem [thread:$0]  %s581_s1, 256, %s29_s20, [#allocation6], %s496_s15, %s496_s15, %s497_s16  }
  0x19   :  { %489 = dma.done.wait [#allocation3], 256  }
  0x1a   :  { %490 = vsyncadd [#allocation3], 4294967040 }
  0x1b   :  { %491 = dma.done.wait [#allocation6], 256  }
  0x1c   :  { %492 = vsyncadd [#allocation6], 4294967040  ;;  %v48_v0 = vlaneseq  ;;  %v45_v5 = vld [vmem:[#allocation2 + $0x8] sm:$0xf]  ;;  %v47_v6 = vld [vmem:[%s582_s2] sm:$0x3] }
  0x1d   :  { %v43_v7 = vld [vmem:[#allocation2] sm:$0xf]  ;;  %v46_v9 = vld [vmem:[#allocation2 + $0xc] sm:$0xf]  ;;  %v44_v10 = vld [vmem:[#allocation2 + $0x4] sm:$0xf] }
  0x1e   :  { %v49_v1 = vshrl.u32 %v48_v0, 7  ;;  %v315_v2 = vand.u32 127, %v48_v0  ;;  %vm56_vm0 = vcmask 27648   ;;  %v82_v19 = vld [vmem:[#allocation5] sm:$0xf]  ;;  %v499_v25 = vmov 0  }
  0x1f   :  { %v83_v24 = vld [vmem:[#allocation5 + $0x4] sm:$0xf]  ;;  %427 = vset.pattern.permute.xlu1 %v499_v25  ;;  %428 = vset.pattern.permute.xlu0 %v499_v25  ;;  %v84_v28 = vld [vmem:[#allocation5 + $0x8] sm:$0xf]  ;;  %v85_v31 = vld [vmem:[#allocation5 + $0xc] sm:$0xf] }
  0x20   :  { %v50_v3 = vsub.s32 0, %v49_v1  ;;  %v533_v4 = vsub.s32 %v315_v2, %v49_v1  ;;  %v71_v21 = vsub.s32 1, %v49_v1  ;;  %v106_v34 = vsub.s32 2, %v49_v1  ;;  %s500_s1 = smov [#allocation7]  }
  0x21   :  { %v113_v39 = vsub.s32 3, %v49_v1  ;;  %vm380_vm1 = vcmask 1041409   ;;  %vm382_vm2 = vcmask 1042434   ;;  %vm384_vm3 = vcmask 1043459   ;;  %s408_s2 = sshll.u32 %s500_s1, 4  ;;  %s409_s2 = int_to_ptr.vmem [resolvable:$true] %s408_s2 }
  0x22   :  { %v51_v8 = vrot.slane %v47_v6, %v50_v3  ;;  %v93_v20 = vrot.slane %v82_v19, %v50_v3  ;;  %v100_v22 = vrot.slane %v82_v19, %v71_v21  ;;  %v72_v23 = vrot.slane %v47_v6, %v71_v21  ;;  %s469_s25 = scalar_lea.vmem %s409_s2, 256  ;;  %p474_p11 = scmp.lt.s32.totalorder %s409_s2, %s409_s2 }
  0x23   :  { %v121_v26 = vrot.slane %v83_v24, %v50_v3  ;;  %v128_v27 = vrot.slane %v83_v24, %v71_v21  ;;  %v149_v29 = vrot.slane %v84_v28, %v50_v3  ;;  %v156_v30 = vrot.slane %v84_v28, %v71_v21  ;;  %p470_p10 = scmp.ne.s32.totalorder %s409_s2, %s469_s25  ;;  %p475_p12 = scmp.lt.s32.totalorder %s469_s25, %s469_s25 }
  0x24   :  { %v54_v11 = vmul.f32 %v51_v8, %v45_v5  ;;  %v52_v12 = vmul.f32 %v51_v8, %v43_v7  ;;  %v55_v13 = vmul.f32 %v51_v8, %v46_v9  ;;  %v53_v14 = vmul.f32 %v51_v8, %v44_v10 }
  0x25   :  { %v177_v32 = vrot.slane %v85_v31, %v50_v3  ;;  %v184_v33 = vrot.slane %v85_v31, %v71_v21  ;;  %v107_v35 = vrot.slane %v82_v19, %v106_v34  ;;  %v135_v36 = vrot.slane %v83_v24, %v106_v34  ;;  %p476_p13 = por %p475_p12, %p474_p11 }
  0x26   :  { %v63_v15 = vsel %vm56_vm0, %v54_v11, 0.0  ;;  %v57_v16 = vsel %vm56_vm0, %v52_v12, 0.0  ;;  %v66_v17 = vsel %vm56_vm0, %v55_v13, 0.0  ;;  %v60_v18 = vsel %vm56_vm0, %v53_v14, 0.0 }
  0x27   :  { %64 = vadd.xlane.f32.xlu1 %v63_v15  ;;  %58 = vadd.xlane.f32.xlu0 %v57_v16  ;;  %v163_v37 = vrot.slane %v84_v28, %v106_v34  ;;  %v191_v38 = vrot.slane %v85_v31, %v106_v34  ;;  %v114_v40 = vrot.slane %v82_v19, %v113_v39  ;;  %p477_p0 = pnand %p476_p13, %p470_p10 }
  0x28   :  { %v142_v41 = vrot.slane %v83_v24, %v113_v39  ;;  %v170_v42 = vrot.slane %v84_v28, %v113_v39  ;;  %v198_v43 = vrot.slane %v85_v31, %v113_v39 }
  0x2b   :  { %67 = vadd.xlane.f32.xlu1 %v66_v17  ;;  %61 = vadd.xlane.f32.xlu0 %v60_v18 }
  0x3c   :  { %95 = vbcast.lane.b32.xlu1 %v93_v20, 256 }
  0x40   :  { %102 = vbcast.lane.b32.xlu1 %v100_v22, 256 }
  0x41   :  { %75 = vbcast.lane.b32.xlu0 %v72_v23, 256 }
  0x44   :  { %123 = vbcast.lane.b32.xlu1 %v121_v26, 256 }
  0x45   :  { %130 = vbcast.lane.b32.xlu0 %v128_v27, 256 }
  0x48   :  { %151 = vbcast.lane.b32.xlu1 %v149_v29, 256 }
  0x49   :  { %158 = vbcast.lane.b32.xlu0 %v156_v30, 256 }
  0x4c   :  { %179 = vbcast.lane.b32.xlu1 %v177_v32, 256 }
  0x4d   :  { %186 = vbcast.lane.b32.xlu0 %v184_v33, 256 }
  0x50   :  { %109 = vbcast.lane.b32.xlu1 %v107_v35, 256 }
  0x51   :  { %137 = vbcast.lane.b32.xlu0 %v135_v36, 256 }
  0x54   :  { %165 = vbcast.lane.b32.xlu1 %v163_v37, 256 }
  0x55   :  { %193 = vbcast.lane.b32.xlu0 %v191_v38, 256 }
  0x58   :  { %116 = vbcast.lane.b32.xlu1 %v114_v40, 256 }
  0x59   :  { %144 = vbcast.lane.b32.xlu0 %v142_v41, 256 }
  0x5c   :  { %172 = vbcast.lane.b32.xlu1 %v170_v42, 256 }
  0x5d   :  { %200 = vbcast.lane.b32.xlu0 %v198_v43, 256 }
  0xb0   :  { %v65_v44 = vpop.xlane.xlu1 %64  ;;  %v59_v45 = vpop.xlane.xlu0 %58 }
  0xb4   :  { %v68_v46 = vpop.xlane.xlu1 %67  ;;  %v62_v47 = vpop.xlane.xlu0 %61 }
  0xb8   :  { %v96_v48 = vpop.permute.xlu1 %95  ;;  %v76_v49 = vpop.permute.xlu0 %75 }
  0xb9   :  { %v78_v50 = vadd.f32 %v76_v49, %v59_v45  ;;  %v79_v51 = vadd.f32 %v76_v49, %v62_v47  ;;  %v80_v9 = vadd.f32 %v76_v49, %v65_v44  ;;  %v81_v22 = vadd.f32 %v76_v49, %v68_v46 }
  0xbb   :  { %v218_v52 = vadd.f32 %v96_v48, %v78_v50 }
  0xbc   :  { %v103_v53 = vpop.permute.xlu1 %102  ;;  %v131_v54 = vpop.permute.xlu0 %130 }
  0xbd   :  { %v219_v55 = vadd.f32 %v103_v53, %v79_v51  ;;  %v234_v56 = vmax.f32 %v218_v52, 0.0  ;;  %v223_v61 = vadd.f32 %v131_v54, %v79_v51 }
  0xbf   :  { %v235_v57 = vmax.f32 %v219_v55, 0.0  ;;  %267 = vperm.xlu1 %427, %v234_v56   ;;  %v239_v2 = vmax.f32 %v223_v61, 0.0 }
  0xc0   :  { %v124_v58 = vpop.permute.xlu1 %123  ;;  %v159_v59 = vpop.permute.xlu0 %158 }
  0xc1   :  { %v222_v60 = vadd.f32 %v124_v58, %v78_v50  ;;  %270 = vperm.xlu0 %428, %v235_v57   ;;  %v227_v3 = vadd.f32 %v159_v59, %v79_v51 }
  0xc3   :  { %v238_v62 = vmax.f32 %v222_v60, 0.0  ;;  %v243_v10 = vmax.f32 %v227_v3, 0.0 }
  0xc4   :  { %v152_v63 = vpop.permute.xlu1 %151  ;;  %v187_v0 = vpop.permute.xlu0 %186 }
  0xc5   :  { %v226_v1 = vadd.f32 %v152_v63, %v78_v50  ;;  %279 = vperm.xlu1 %427, %v238_v62   ;;  %v231_v11 = vadd.f32 %v187_v0, %v79_v51 }
  0xc7   :  { %v242_v5 = vmax.f32 %v226_v1, 0.0  ;;  %v247_v16 = vmax.f32 %v231_v11, 0.0 }
  0xc8   :  { %v180_v6 = vpop.permute.xlu1 %179  ;;  %v138_v7 = vpop.permute.xlu0 %137 }
  0xc9   :  { %v230_v8 = vadd.f32 %v180_v6, %v78_v50  ;;  %291 = vperm.xlu0 %428, %v242_v5   ;;  %282 = vperm.xlu1 %427, %v239_v2   ;;  %v224_v17 = vadd.f32 %v138_v7, %v80_v9 }
  0xcb   :  { %v246_v12 = vmax.f32 %v230_v8, 0.0  ;;  %v240_v23 = vmax.f32 %v224_v17, 0.0 }
  0xcc   :  { %v110_v13 = vpop.permute.xlu1 %109  ;;  %v194_v14 = vpop.permute.xlu0 %193 }
  0xcd   :  { %v220_v15 = vadd.f32 %v110_v13, %v80_v9  ;;  %303 = vperm.xlu0 %428, %v246_v12   ;;  %294 = vperm.xlu1 %427, %v243_v10   ;;  %v232_v24 = vadd.f32 %v194_v14, %v80_v9 }
  0xcf   :  { %v236_v18 = vmax.f32 %v220_v15, 0.0  ;;  %v248_v28 = vmax.f32 %v232_v24, 0.0 }
  0xd0   :  { %v166_v19 = vpop.permute.xlu1 %165  ;;  %v145_v21 = vpop.permute.xlu0 %144 }
  0xd1   :  { %v228_v20 = vadd.f32 %v166_v19, %v80_v9  ;;  %273 = vperm.xlu0 %428, %v236_v18   ;;  %306 = vperm.xlu1 %427, %v247_v16   ;;  %v225_v29 = vadd.f32 %v145_v21, %v81_v22 }
  0xd3   :  { %v244_v25 = vmax.f32 %v228_v20, 0.0  ;;  %v241_v34 = vmax.f32 %v225_v29, 0.0 }
  0xd4   :  { %v117_v26 = vpop.permute.xlu1 %116  ;;  %v201_v31 = vpop.permute.xlu0 %200 }
  0xd5   :  { %v221_v27 = vadd.f32 %v117_v26, %v81_v22  ;;  %297 = vperm.xlu0 %428, %v244_v25   ;;  %285 = vperm.xlu1 %427, %v240_v23   ;;  %v233_v35 = vadd.f32 %v201_v31, %v81_v22 }
  0xd7   :  { %v237_v30 = vmax.f32 %v221_v27, 0.0  ;;  %v249_v37 = vmax.f32 %v233_v35, 0.0 }
  0xd8   :  { %v173_v32 = vpop.permute.xlu1 %172 }
  0xd9   :  { %v229_v33 = vadd.f32 %v173_v32, %v81_v22  ;;  %276 = vperm.xlu0 %428, %v237_v30   ;;  %309 = vperm.xlu1 %427, %v248_v28  }
  0xdb   :  { %v245_v36 = vmax.f32 %v229_v33, 0.0 }
  0xdd   :  { %300 = vperm.xlu0 %428, %v245_v36   ;;  %288 = vperm.xlu1 %427, %v241_v34  }
  0xe1   :  { %312 = vperm.xlu1 %427, %v249_v37  }
 0x13a   :  { %v268_v38 = vpop.permute.xlu1 %267 }
 0x13b   :  { %v319_v51 = vrot.slane %v268_v38, %v533_v4 }
 0x13c   :  { %v271_v39 = vpop.permute.xlu0 %270 }
 0x13d   :  { %v323_v49 = vrot.slane %v271_v39, %v533_v4 }
 0x13f   :  { %v381_v55 = vsel %vm380_vm1, %v323_v49, %v319_v51 }
 0x140   :  { %v280_v40 = vpop.permute.xlu1 %279 }
 0x141   :  { %v335_v58 = vrot.slane %v280_v40, %v533_v4 }
 0x144   :  { %v283_v41 = vpop.permute.xlu1 %282  ;;  %v292_v42 = vpop.permute.xlu0 %291 }
 0x145   :  { %v339_v52 = vrot.slane %v283_v41, %v533_v4  ;;  %v351_v62 = vrot.slane %v292_v42, %v533_v4 }
 0x147   :  { %v386_v0 = vsel %vm380_vm1, %v339_v52, %v335_v58 }
 0x148   :  { %v295_v43 = vpop.permute.xlu1 %294  ;;  %v304_v44 = vpop.permute.xlu0 %303 }
 0x149   :  { %v355_v56 = vrot.slane %v295_v43, %v533_v4  ;;  %v367_v11 = vrot.slane %v304_v44, %v533_v4 }
 0x14b   :  { %v389_v3 = vsel %vm380_vm1, %v355_v56, %v351_v62 }
 0x14c   :  { %v307_v45 = vpop.permute.xlu1 %306  ;;  %v274_v46 = vpop.permute.xlu0 %273 }
 0x14d   :  { %v327_v50 = vrot.slane %v274_v46, %v533_v4  ;;  %v371_v5 = vrot.slane %v307_v45, %v533_v4 }
 0x14f   :  { %v383_v59 = vsel %vm382_vm2, %v327_v50, %v381_v55  ;;  %v392_v15 = vsel %vm380_vm1, %v371_v5, %v367_v11 }
 0x150   :  { %v286_v47 = vpop.permute.xlu1 %285  ;;  %v298_v48 = vpop.permute.xlu0 %297 }
 0x151   :  { %v343_v60 = vrot.slane %v286_v47, %v533_v4  ;;  %v359_v61 = vrot.slane %v298_v48, %v533_v4 }
 0x153   :  { %v387_v8 = vsel %vm382_vm2, %v343_v60, %v386_v0  ;;  %v390_v9 = vsel %vm382_vm2, %v359_v61, %v389_v3 }
 0x154   :  { %v310_v53 = vpop.permute.xlu1 %309  ;;  %v277_v54 = vpop.permute.xlu0 %276 }
 0x155   :  { %v331_v57 = vrot.slane %v277_v54, %v533_v4  ;;  %v375_v10 = vrot.slane %v310_v53, %v533_v4 }
 0x157   :  { %v385_v63 = vsel %vm384_vm3, %v331_v57, %v383_v59  ;;  %v393_v17 = vsel %vm382_vm2, %v375_v10, %v392_v15 }
 0x158   :  { %399 = vst.msk [vmem:[#allocation7] sm:$0xf] %vm56_vm0, %v385_v63  ;;  %v289_v1 = vpop.permute.xlu1 %288  ;;  %v301_v2 = vpop.permute.xlu0 %300 }
 0x159   :  { %v347_v6 = vrot.slane %v289_v1, %v533_v4  ;;  %v363_v7 = vrot.slane %v301_v2, %v533_v4 }
 0x15b   :  { %v388_v12 = vsel %vm384_vm3, %v347_v6, %v387_v8  ;;  %v391_v13 = vsel %vm384_vm3, %v363_v7, %v390_v9 }
 0x15c   :  { %400 = vst.msk [vmem:[#allocation7 + $0x4] sm:$0xf] %vm56_vm0, %v388_v12  ;;  %401 = vst.msk [vmem:[#allocation7 + $0x8] sm:$0xf] %vm56_vm0, %v391_v13  ;;  %v313_v14 = vpop.permute.xlu1 %312 }
 0x15d   :  { %v379_v16 = vrot.slane %v313_v14, %v533_v4 }
 0x15f   :  { %v394_v18 = vsel %vm384_vm3, %v379_v16, %v393_v17 }
 0x160   :  { %402 = vst.msk [vmem:[#allocation7 + $0xc] sm:$0xf] %vm56_vm0, %v394_v18 }
 0x161   :  { %480 = shalt.err (!%p477_p0)
}
 0x162   :  { %414 = dma.vmem_to_hbm [thread:$0]  %s409_s2, 256, %s583_s3, [#allocation4], %s496_s15, %s496_s15, %s497_s16  }
 0x163   :  { %493 = dma.done.wait [#allocation4], 256  }
 0x164   :  { %494 = vsyncadd [#allocation4], 4294967040 }
 0x165   :  { %418 = vsyncpa [#allocation3], 1 }
 0x166   :  { %419 = vsyncpa [#allocation6], 1 }
 0x167   :  { %420 = vsyncpa [#allocation4], 1 }

</bundles_post_ra>
